<compile_context>
chip_gen: v7x
topology: tpu7x:2x2x1
jax: 0.10.0
libtpu: 0.0.40
codegen_flags: <defaults>
</compile_context>

<pallas_src>
import functools

import jax
import jax.numpy as jnp
from jax.experimental import pallas as pl
from jax.experimental.pallas import tpu as pltpu


def _policy_kernel(x_ref, w1_ref, b1_ref, w2_ref, b2_ref, w3_ref, b3_ref,
                   o_ref, *, mean_range, stdev_coeff, matmul_dtype):
    # x tile arrives in its native [TB, N] layout; contract both operands on
    # their last (feature) axis -> result is [N, TB], i.e. batch on the lane
    # axis for the rest of the network (lane-dense activations & stores).
    x = x_ref[...].astype(matmul_dtype)                          # [TB, N]

    # Linear(n, n) + Tanh   (Dropout = identity in eval mode)
    h1 = jnp.tanh(
        jax.lax.dot_general(w1_ref[...], x,
                            dimension_numbers=(((1,), (1,)), ((), ())),
                            preferred_element_type=jnp.float32)
        + b1_ref[...])                                           # [N, TB] f32

    # Linear(n, n//2) + Tanh   (Dropout = identity in eval mode)
    h2 = jnp.tanh(
        jnp.dot(w2_ref[...], h1.astype(matmul_dtype),
                preferred_element_type=jnp.float32)
        + b2_ref[...])                                           # [H, TB] f32

    # Linear(n//2, 2) — tiny head, kept f32.  Row 1 of w3/b3 was pre-scaled by
    # 0.5 in the wrapper, so one tanh pass computes both heads:
    #   row 0: tanh(z0)                row 1: tanh(z1 / 2)
    logits = (jnp.dot(w3_ref[...], h2, preferred_element_type=jnp.float32)
              + b3_ref[...])                                     # [2, TB]
    t = jnp.tanh(logits)                                         # single EUP pass

    # Per-row scale / offset / lower-clip via [2, 1] broadcasts (no sublane
    # slices, no concat).  row 0 = mean head, row 1 = stdev head.
    row = jax.lax.broadcasted_iota(jnp.int32, (2, 1), 0).astype(jnp.float32)
    half_sc = 0.5 * stdev_coeff
    scale = mean_range * (1.0 - row) + half_sc * row             # [mr, sc/2]
    offset = half_sc * row                                       # [0 , sc/2]
    lower = 0.05 * row + 3.0e38 * (row - 1.0)                    # [-big, 0.05]
    # row0: tanh(z0)*mean_range ;  row1: max(sc*sigmoid(z1), 0.05)
    o_ref[...] = jnp.maximum(t * scale + offset, lower)          # [2, TB]


def _round_up(v, m):
    return (v + m - 1) // m * m


def policy_network_forward(x, params, *, mean_range=1.0, stdev_coeff=0.1,
                           block_b=4096, min_grid_steps=2,
                           matmul_dtype=None, transpose_output=True):
    """x: [B, N] -> [B, 2] (PolicyNetwork forward, eval mode).

    If transpose_output=False, returns the lane-dense [2, B] kernel output
    directly (useful when the consumer can take that layout).
    """
    w1, b1, w2, b2, w3, b3 = params           # W: [out, in], b: [out, 1]
    B, N = x.shape
    H = N // 2

    if matmul_dtype is None:
        matmul_dtype = x.dtype                # stream x as-is; no extra casts

    # Pre-cast the tiny, VMEM-resident weights once (no per-step re-cast).
    w1c = w1.astype(matmul_dtype)
    w2c = w2.astype(matmul_dtype)
    b1f = b1.astype(jnp.float32)
    b2f = b2.astype(jnp.float32)
    # Fold sigmoid half-angle identity into the stdev head: scale row 1 by 0.5.
    row_scale = jnp.array([[1.0], [0.5]], jnp.float32)
    w3s = w3.astype(jnp.float32) * row_scale
    b3s = b3.astype(jnp.float32) * row_scale

    # Batch tile: multiple of 128 (lane-dense), as large as useful, but capped
    # so the grid keeps >= min_grid_steps steps (v7x: both TCs share the
    # "parallel" batch axis).  No explicit padding of x: Pallas masks the
    # ragged edge block and garbage batch columns are discarded.
    block_b = max(128, _round_up(block_b, 128))
    cap = max(128, _round_up(pl.cdiv(B, min_grid_steps), 128))
    TB = min(block_b, cap, _round_up(B, 128))
    grid = (pl.cdiv(B, TB),)

    kernel = functools.partial(_policy_kernel,
                               mean_range=float(mean_range),
                               stdev_coeff=float(stdev_coeff),
                               matmul_dtype=matmul_dtype)

    def resident(shape):
        # Constant index_map -> DMA'd once, stays VMEM-resident across grid.
        return pl.BlockSpec(shape, lambda i: (0, 0))

    x_item = jnp.dtype(x.dtype).itemsize
    w_item = jnp.dtype(matmul_dtype).itemsize
    cost = pl.CostEstimate(
        flops=2 * B * (N * N + N * H + H * 2),
        transcendentals=B * (N + H + 2),
        bytes_accessed=(B * N * x_item                       # x, read once
                        + (N * N + H * N) * w_item + 2 * H * 4  # weights
                        + 4 * (N + H + 2)                    # biases
                        + 4 * 2 * B),                        # output
    )

    outT = pl.pallas_call(
        kernel,
        out_shape=jax.ShapeDtypeStruct((2, B), jnp.float32),
        grid=grid,
        in_specs=[
            # x streamed once in native [B, N] layout (contiguous HBM slabs).
            # TODO(synk): add pipeline_mode=pl.Buffered(3) here if profiling
            # shows exposed DMA on the x stream.
            pl.BlockSpec((TB, N), lambda i: (i, 0)),
            resident((N, N)), resident((N, 1)),              # w1, b1
            resident((H, N)), resident((H, 1)),              # w2, b2
            resident((2, H)), resident((2, 1)),              # w3, b3
        ],
        out_specs=pl.BlockSpec((2, TB), lambda i: (0, i)),
        compiler_params=pltpu.CompilerParams(
            dimension_semantics=("parallel",)),              # both TCs on v7x
        cost_estimate=cost,
    )(x, w1c, b1f, w2c, b2f, w3s, b3s)

    if not transpose_output:
        return outT                                          # [2, B] lane-dense
    # Cheap [2, B] -> [B, 2] view for module parity.
    return outT.T


def init_params(key, n):
    """PyTorch-style init: W [out, in], b [out, 1], uniform +/- 1/sqrt(fan_in)."""
    def linear(k, fan_in, fan_out):
        kw, kb = jax.random.split(k)
        bound = 1.0 / jnp.sqrt(fan_in)
        w = jax.random.uniform(kw, (fan_out, fan_in), jnp.float32, -bound, bound)
        b = jax.random.uniform(kb, (fan_out, 1), jnp.float32, -bound, bound)
        return w, b

    k1, k2, k3 = jax.random.split(key, 3)
    w1, b1 = linear(k1, n, n)
    w2, b2 = linear(k2, n, n // 2)
    w3, b3 = linear(k3, n // 2, 2)
    return (w1, b1, w2, b2, w3, b3)


def reference_forward(x, params, *, mean_range=1.0, stdev_coeff=0.1):
    w1, b1, w2, b2, w3, b3 = params
    h1 = jnp.tanh(x @ w1.T + b1[:, 0])
    h2 = jnp.tanh(h1 @ w2.T + b2[:, 0])
    logits = h2 @ w3.T + b3[:, 0]
    mean = jnp.tanh(logits[:, 0:1]) * mean_range
    std = jnp.clip(jax.nn.sigmoid(logits[:, 1:2]) * stdev_coeff, 0.05, None)
    return jnp.concatenate([mean, std], axis=-1)


if __name__ == "__main__":
    n = 32
    batch = 8
    key = jax.random.PRNGKey(0)
    kx, kp, kx2 = jax.random.split(key, 3)

    x = jax.random.normal(kx, (batch, n), jnp.float32)
    params = init_params(kp, n)
    ref = reference_forward(x, params, mean_range=1.0, stdev_coeff=0.1)

    # f32 path (single ragged tile, B < 128).
    out = policy_network_forward(x, params, mean_range=1.0, stdev_coeff=0.1)
    out = jax.block_until_ready(out)
    assert out.shape == (batch, 2), out.shape
    assert jnp.allclose(out, ref, atol=1e-5, rtol=1e-5), (out, ref)

    # Multi-tile grid with a ragged edge block (no host-side padding of x).
    batch2 = 300
    x2 = jax.random.normal(kx2, (batch2, n), jnp.float32)
    ref2 = reference_forward(x2, params, mean_range=1.0, stdev_coeff=0.1)
    out2 = policy_network_forward(x2, params, mean_range=1.0, stdev_coeff=0.1,
                                  block_b=128)
    out2 = jax.block_until_ready(out2)
    assert out2.shape == (batch2, 2), out2.shape
    assert jnp.allclose(out2, ref2, atol=1e-5, rtol=1e-5), (out2, ref2)

    # bf16 matmul-operand path (f32 MXU accumulation): approximate vs reference.
    out_bf16 = policy_network_forward(x, params, mean_range=1.0,
                                      stdev_coeff=0.1,
                                      matmul_dtype=jnp.bfloat16)
    out_bf16 = jax.block_until_ready(out_bf16)
    assert jnp.allclose(out_bf16, ref, atol=5e-2), (out_bf16, ref)

    print("KERNEL_OK")
</pallas_src>

<mosaic_0001>
module attributes {stable_mosaic.version = 11 : i64} {
  func.func @_policy_kernel(%arg0: i32, %arg1: memref<128x32xf32, #tpu.memory_space<vmem>>, %arg2: memref<32x32xf32, #tpu.memory_space<vmem>>, %arg3: memref<32x1xf32, #tpu.memory_space<vmem>>, %arg4: memref<16x32xf32, #tpu.memory_space<vmem>>, %arg5: memref<16x1xf32, #tpu.memory_space<vmem>>, %arg6: memref<2x16xf32, #tpu.memory_space<vmem>>, %arg7: memref<2x1xf32, #tpu.memory_space<vmem>>, %arg8: memref<2x128xf32, #tpu.memory_space<vmem>>) attributes {dimension_semantics = [#tpu.dimension_semantics<parallel>], iteration_bounds = array<i64: 1>, scalar_prefetch = 0 : i64, scratch_operands = 0 : i64, tpu.core_type = #tpu.core_type<tc>, window_params = [{transform_indices = @transform_0, window_bounds = array<i64: 128, 32>}, {pipeline_mode = #tpu.pipeline_mode<synchronous>, transform_indices = @transform_1, window_bounds = array<i64: 32, 32>}, {pipeline_mode = #tpu.pipeline_mode<synchronous>, transform_indices = @transform_2, window_bounds = array<i64: 32, 1>}, {pipeline_mode = #tpu.pipeline_mode<synchronous>, transform_indices = @transform_3, window_bounds = array<i64: 16, 32>}, {pipeline_mode = #tpu.pipeline_mode<synchronous>, transform_indices = @transform_4, window_bounds = array<i64: 16, 1>}, {pipeline_mode = #tpu.pipeline_mode<synchronous>, transform_indices = @transform_5, window_bounds = array<i64: 2, 16>}, {pipeline_mode = #tpu.pipeline_mode<synchronous>, transform_indices = @transform_6, window_bounds = array<i64: 2, 1>}, {transform_indices = @transform_7, window_bounds = array<i64: 2, 128>}]} {
    %c0 = arith.constant 0 : index
    %c0_0 = arith.constant 0 : index
    %0 = vector.load %arg1[%c0, %c0_0] : memref<128x32xf32, #tpu.memory_space<vmem>>, vector<128x32xf32>
    %c0_1 = arith.constant 0 : index
    %c0_2 = arith.constant 0 : index
    %1 = vector.load %arg2[%c0_1, %c0_2] : memref<32x32xf32, #tpu.memory_space<vmem>>, vector<32x32xf32>
    %cst = arith.constant dense<0.000000e+00> : vector<32x128xf32>
    %2 = tpu.matmul %1, %0, %cst {dimension_numbers = #tpu.dot_dimension_numbers<[1], [1], [0], [0], [0, 0, 1, 0], [], []>} : vector<32x32xf32>, vector<128x32xf32>, vector<32x128xf32> -> vector<32x128xf32>
    %c0_3 = arith.constant 0 : index
    %c0_4 = arith.constant 0 : index
    %3 = vector.load %arg3[%c0_3, %c0_4] : memref<32x1xf32, #tpu.memory_space<vmem>>, vector<32x1xf32>
    %4 = vector.broadcast %3 : vector<32x1xf32> to vector<32x128xf32>
    %5 = arith.addf %2, %4 : vector<32x128xf32>
    %6 = math.tanh %5 : vector<32x128xf32>
    %c0_5 = arith.constant 0 : index
    %c0_6 = arith.constant 0 : index
    %7 = vector.load %arg4[%c0_5, %c0_6] : memref<16x32xf32, #tpu.memory_space<vmem>>, vector<16x32xf32>
    %cst_7 = arith.constant dense<0.000000e+00> : vector<16x128xf32>
    %8 = tpu.matmul %7, %6, %cst_7 {dimension_numbers = #tpu.dot_dimension_numbers<[1], [0], [0], [1], [0, 0, 1, 1], [], []>} : vector<16x32xf32>, vector<32x128xf32>, vector<16x128xf32> -> vector<16x128xf32>
    %c0_8 = arith.constant 0 : index
    %c0_9 = arith.constant 0 : index
    %9 = vector.load %arg5[%c0_8, %c0_9] : memref<16x1xf32, #tpu.memory_space<vmem>>, vector<16x1xf32>
    %10 = vector.broadcast %9 : vector<16x1xf32> to vector<16x128xf32>
    %11 = arith.addf %8, %10 : vector<16x128xf32>
    %12 = math.tanh %11 : vector<16x128xf32>
    %c0_10 = arith.constant 0 : index
    %c0_11 = arith.constant 0 : index
    %13 = vector.load %arg6[%c0_10, %c0_11] : memref<2x16xf32, #tpu.memory_space<vmem>>, vector<2x16xf32>
    %cst_12 = arith.constant dense<0.000000e+00> : vector<2x128xf32>
    %14 = tpu.matmul %13, %12, %cst_12 {dimension_numbers = #tpu.dot_dimension_numbers<[1], [0], [0], [1], [0, 0, 1, 1], [], []>} : vector<2x16xf32>, vector<16x128xf32>, vector<2x128xf32> -> vector<2x128xf32>
    %c0_13 = arith.constant 0 : index
    %c0_14 = arith.constant 0 : index
    %15 = vector.load %arg7[%c0_13, %c0_14] : memref<2x1xf32, #tpu.memory_space<vmem>>, vector<2x1xf32>
    %16 = vector.broadcast %15 : vector<2x1xf32> to vector<2x128xf32>
    %17 = arith.addf %14, %16 : vector<2x128xf32>
    %18 = math.tanh %17 : vector<2x128xf32>
    %19 = tpu.iota {dimensions = array<i32: 0>} : vector<2x1xi32>
    %20 = arith.sitofp %19 : vector<2x1xi32> to vector<2x1xf32>
    %cst_15 = arith.constant 1.000000e+00 : f32
    %21 = vector.broadcast %cst_15 : f32 to vector<2x1xf32>
    %22 = arith.subf %21, %20 : vector<2x1xf32>
    %cst_16 = arith.constant 1.000000e+00 : f32
    %23 = vector.broadcast %cst_16 : f32 to vector<2x1xf32>
    %24 = arith.mulf %23, %22 : vector<2x1xf32>
    %cst_17 = arith.constant 5.000000e-02 : f32
    %25 = vector.broadcast %cst_17 : f32 to vector<2x1xf32>
    %26 = arith.mulf %25, %20 : vector<2x1xf32>
    %27 = arith.addf %24, %26 : vector<2x1xf32>
    %cst_18 = arith.constant 5.000000e-02 : f32
    %28 = vector.broadcast %cst_18 : f32 to vector<2x1xf32>
    %29 = arith.mulf %28, %20 : vector<2x1xf32>
    %cst_19 = arith.constant 5.000000e-02 : f32
    %30 = vector.broadcast %cst_19 : f32 to vector<2x1xf32>
    %31 = arith.mulf %30, %20 : vector<2x1xf32>
    %cst_20 = arith.constant 1.000000e+00 : f32
    %32 = vector.broadcast %cst_20 : f32 to vector<2x1xf32>
    %33 = arith.subf %20, %32 : vector<2x1xf32>
    %cst_21 = arith.constant 3.000000e+38 : f32
    %34 = vector.broadcast %cst_21 : f32 to vector<2x1xf32>
    %35 = arith.mulf %34, %33 : vector<2x1xf32>
    %36 = arith.addf %31, %35 : vector<2x1xf32>
    %37 = vector.broadcast %27 : vector<2x1xf32> to vector<2x128xf32>
    %38 = arith.mulf %18, %37 : vector<2x128xf32>
    %39 = vector.broadcast %29 : vector<2x1xf32> to vector<2x128xf32>
    %40 = arith.addf %38, %39 : vector<2x128xf32>
    %41 = vector.broadcast %36 : vector<2x1xf32> to vector<2x128xf32>
    %42 = arith.maximumf %40, %41 : vector<2x128xf32>
    %c0_22 = arith.constant 0 : index
    %c0_23 = arith.constant 0 : index
    %43 = vector.load %arg8[%c0_22, %c0_23] : memref<2x128xf32, #tpu.memory_space<vmem>>, vector<2x128xf32>
    tpu.vector_store %arg8[%c0_22, %c0_23], %42 {strides = array<i32>} : memref<2x128xf32, #tpu.memory_space<vmem>>, vector<2x128xf32>,
    return
  }
  func.func @transform_0(%arg0: i32) -> (i32, i32) {
    %c0_i32 = arith.constant 0 : i32
    %c0_i32_0 = arith.constant 0 : i32
    return %arg0, %c0_i32 : i32, i32
  }
  func.func @transform_1(%arg0: i32) -> (i32, i32) {
    %c0_i32 = arith.constant 0 : i32
    %c0_i32_0 = arith.constant 0 : i32
    %c0_i32_1 = arith.constant 0 : i32
    return %c0_i32, %c0_i32_0 : i32, i32
  }
  func.func @transform_2(%arg0: i32) -> (i32, i32) {
    %c0_i32 = arith.constant 0 : i32
    %c0_i32_0 = arith.constant 0 : i32
    %c0_i32_1 = arith.constant 0 : i32
    return %c0_i32, %c0_i32_0 : i32, i32
  }
  func.func @transform_3(%arg0: i32) -> (i32, i32) {
    %c0_i32 = arith.constant 0 : i32
    %c0_i32_0 = arith.constant 0 : i32
    %c0_i32_1 = arith.constant 0 : i32
    return %c0_i32, %c0_i32_0 : i32, i32
  }
  func.func @transform_4(%arg0: i32) -> (i32, i32) {
    %c0_i32 = arith.constant 0 : i32
    %c0_i32_0 = arith.constant 0 : i32
    %c0_i32_1 = arith.constant 0 : i32
    return %c0_i32, %c0_i32_0 : i32, i32
  }
  func.func @transform_5(%arg0: i32) -> (i32, i32) {
    %c0_i32 = arith.constant 0 : i32
    %c0_i32_0 = arith.constant 0 : i32
    %c0_i32_1 = arith.constant 0 : i32
    return %c0_i32, %c0_i32_0 : i32, i32
  }
  func.func @transform_6(%arg0: i32) -> (i32, i32) {
    %c0_i32 = arith.constant 0 : i32
    %c0_i32_0 = arith.constant 0 : i32
    %c0_i32_1 = arith.constant 0 : i32
    return %c0_i32, %c0_i32_0 : i32, i32
  }
  func.func @transform_7(%arg0: i32) -> (i32, i32) {
    %c0_i32 = arith.constant 0 : i32
    %c0_i32_0 = arith.constant 0 : i32
    return %c0_i32, %arg0 : i32, i32
  }
}

</mosaic_0001>

<bundles_post_ra>
// kernel: tpu_custom_call.1
= control target key start
LH: loop header
LB: loop body
LE: loop exit
PB: predicated region body
PF: predicated region fallthrough
CT: control target
= control target key end

     0   :  { %vm71_vm0 = vcmask 261120   ;;  %v640_v6 = vmov 0   ;;  %s831_s0 = inlined_call_operand.vmem [shape: f32[8,32], index: 0, kind: input, shape index: {}]   ;;  %s832_s1 = inlined_call_operand.vmem [shape: f32[32,32], index: 1, kind: input, shape index: {}]   ;;  %s833_s2 = inlined_call_operand.vmem [shape: f32[32,1], index: 2, kind: input, shape index: {}]   ;;  %s834_s3 = inlined_call_operand.vmem [shape: f32[16,32], index: 3, kind: input, shape index: {}]   ;;  %s835_s4 = inlined_call_operand.vmem [shape: f32[16,1], index: 4, kind: input, shape index: {}]   ;;  %s836_s5 = inlined_call_operand.vmem [shape: f32[2,16], index: 5, kind: input, shape index: {}]   ;;  %s837_s6 = inlined_call_operand.vmem [shape: f32[2,1], index: 6, kind: input, shape index: {}]   ;;  %s838_s7 = inlined_call_operand.hbm [shape: f32[2,8], index: 7, kind: output, shape index: {}]  }
   0x1   :  { %v27_v0 = vld [vmem:[%s831_s0] sm:$0xff]  ;;  %v28_v1 = vld [vmem:[%s831_s0 + $0x8] sm:$0xff]  ;;  %v29_v2 = vld [vmem:[%s831_s0 + $0x10] sm:$0xff]  ;;  %600 = vset.pattern.permute.xlu0 %v640_v6  ;;  %601 = vset.pattern.permute.xlu1 %v640_v6 }
   0x2   :  { %v536_v3 = vpack.c.bf16 %v28_v1, %v27_v0  ;;  %vm696_vm1 = vmpackc.low %vm71_vm0, %vm71_vm0  ;;  %v30_v5 = vld [vmem:[%s831_s0 + $0x18] sm:$0xff]  ;;  %v43_v8 = vld [vmem:[%s832_s1] sm:$0xff] }
   0x3   :  { %v542_v7 = vpack.c.bf16 %v30_v5, %v29_v2  ;;  %v31_v9 = vld [vmem:[%s831_s0 + $0x20] sm:$0xff]  ;;  %v32_v10 = vld [vmem:[%s831_s0 + $0x28] sm:$0xff]  ;;  %512 = vmatprep.mubr.msk.f32.mxu0 %vm71_vm0, %v43_v8  ;;  %v49_v12 = vld [vmem:[%s833_s2 + $0x10] sm:$0xff] }
   0x4   :  { %538 = vmatprep.subr.msk.bf16.mxu0 %vm696_vm1, %v536_v3  ;;  %v47_v11 = vld [vmem:[%s833_s2] sm:$0xff]  ;;  %63 = vperm.xlu1 %601, %v49_v12   ;;  %v548_v13 = vpack.c.bf16 %v32_v10, %v31_v9  ;;  %v48_v14 = vld [vmem:[%s833_s2 + $0x8] sm:$0xff] }
   0x5   :  { %541 = vmatpush3.bf16.xpose.msk.msra.mxu0 %vm696_vm1, %v536_v3  ;;  %53 = vperm.xlu0 %600, %v47_v11  }
   0x6   :  { %544 = vmatprep.subr.msk.bf16.mxu0 %vm696_vm1, %v542_v7 }
   0x7   :  { %12 = vsyncpa [#allocation3], 0  ;;  %v50_v15 = vld [vmem:[%s833_s2 + $0x18] sm:$0xff]  ;;  %v223_v16 = vld [vmem:[%s835_s4] sm:$0xff]  ;;  %v641_v57 = vmov 0.0|0.0   ;;  %vm642_vm2 = vmmov 0   ;;  %v400_v5 = vlaneseq }
   0x8   :  { %68 = vperm.xlu1 %601, %v50_v15   ;;  %v33_v17 = vld [vmem:[%s831_s0 + $0x30] sm:$0xff]  ;;  %v34_v18 = vld [vmem:[%s831_s0 + $0x38] sm:$0xff]  ;;  %v224_v19 = vld [vmem:[%s835_s4 + $0x8] sm:$0xff]  ;;  %v643_v58 = vmov 0.0   ;;  %vm325_vm3 = vcmask 130048   ;;  %s644_s8 = smov [#allocation2]  }
   0x9   :  { %58 = vperm.xlu0 %600, %v48_v14   ;;  %v554_v20 = vpack.c.bf16 %v34_v18, %v33_v17  ;;  %v319_v21 = vld [vmem:[%s837_s6] sm:$0x3]  ;;  %v36_v23 = vld [vmem:[%s831_s0 + $0x48] sm:$0xff]  ;;  %v37_v25 = vld [vmem:[%s831_s0 + $0x50] sm:$0xff]  ;;  %v401_v6 = vshrl.u32 %v400_v5, 7 }
   0xa   :  { %v35_v22 = vld [vmem:[%s831_s0 + $0x40] sm:$0xff]  ;;  %v38_v26 = vld [vmem:[%s831_s0 + $0x58] sm:$0xff]  ;;  %v40_v29 = vld [vmem:[%s831_s0 + $0x68] sm:$0xff] }
   0xb   :  { %v560_v24 = vpack.c.bf16 %v36_v23, %v35_v22  ;;  %v566_v27 = vpack.c.bf16 %v38_v26, %v37_v25  ;;  %v39_v28 = vld [vmem:[%s831_s0 + $0x60] sm:$0xff]  ;;  %v41_v31 = vld [vmem:[%s831_s0 + $0x70] sm:$0xff]  ;;  %v42_v32 = vld [vmem:[%s831_s0 + $0x78] sm:$0xff]  ;;  %v402_v11 = vcvt.s32.f32 %v401_v6 }
   0xc   :  { %232 = vperm.xlu1 %601, %v224_v19   ;;  %v572_v30 = vpack.c.bf16 %v40_v29, %v39_v28  ;;  %v578_v33 = vpack.c.bf16 %v42_v32, %v41_v31  ;;  %v44_v34 = vld [vmem:[%s832_s1 + $0x8] sm:$0xff]  ;;  %v45_v35 = vld [vmem:[%s832_s1 + $0x10] sm:$0xff]  ;;  %v46_v36 = vld [vmem:[%s832_s1 + $0x18] sm:$0xff] }
   0xd   :  { %547 = vmatpush3.bf16.xpose.msk.msra.mxu0 %vm696_vm1, %v542_v7  ;;  %227 = vperm.xlu0 %600, %v223_v16   ;;  %v221_v37 = vld [vmem:[%s834_s3] sm:$0xff]  ;;  %v222_v56 = vld [vmem:[%s834_s3 + $0x8] sm:$0xff]  ;;  %v403_v12 = vsub.f32 1.0, %v402_v11  ;;  %v450_v14 = vadd.f32 -1.0, %v402_v11 }
   0xe   :  { %550 = vmatprep.subr.msk.bf16.mxu0 %vm696_vm1, %v548_v13  ;;  %526 = vmatprep.mubr.msk.f32.mxu1 %vm71_vm0, %v221_v37  ;;  %v318_v4 = vld [vmem:[%s836_s5] sm:$0x3]  ;;  %s419_s5 = sshll.u32 %s644_s8, 4  ;;  %s420_s5 = int_to_ptr.vmem [resolvable:$true] %s419_s5 }
   0xf   :  { %v407_v16 = vmul.f32 3e+38, %v450_v14  ;;  %s616_s9 = scalar_lea.vmem %s420_s5, 32  ;;  %p621_p1 = scmp.lt.s32.totalorder %s420_s5, %s420_s5 }
  0x10   :  { %p617_p0 = scmp.ne.s32.totalorder %s420_s5, %s616_s9  ;;  %p622_p2 = scmp.lt.s32.totalorder %s616_s9, %s616_s9 }
  0x11   :  { %322 = vperm.xlu0 %600, %v319_v21  }
  0x12   :  { %p623_p3 = por %p622_p2, %p621_p1 }
  0x14   :  { %p624_p4 = pnand %p623_p3, %p617_p0 }
  0x15   :  { %553 = vmatpush3.bf16.xpose.msk.msra.mxu0 %vm696_vm1, %v548_v13  ;;  %v404_v13 = vmul.f32 0.05, %v402_v11 }
  0x16   :  { %556 = vmatprep.subr.msk.bf16.mxu0 %vm696_vm1, %v554_v20 }
  0x17   :  { %v405_v15 = vadd.f32 %v404_v13, %v403_v12  ;;  %v408_v18 = vadd.f32 %v407_v16, %v404_v13 }
  0x1d   :  { %559 = vmatpush3.bf16.xpose.msk.msra.mxu0 %vm696_vm1, %v554_v20 }
  0x1e   :  { %562 = vmatprep.subr.msk.bf16.mxu0 %vm696_vm1, %v560_v24 }
  0x25   :  { %565 = vmatpush3.bf16.xpose.msk.msra.mxu0 %vm696_vm1, %v560_v24 }
  0x26   :  { %568 = vmatprep.subr.msk.bf16.mxu0 %vm696_vm1, %v566_v27 }
  0x2d   :  { %571 = vmatpush3.bf16.xpose.msk.msra.mxu0 %vm696_vm1, %v566_v27 }
  0x2e   :  { %574 = vmatprep.subr.msk.bf16.mxu0 %vm696_vm1, %v572_v30 }
  0x35   :  { %577 = vmatpush3.bf16.xpose.msk.msra.mxu0 %vm696_vm1, %v572_v30 }
  0x36   :  { %580 = vmatprep.subr.msk.bf16.mxu0 %vm696_vm1, %v578_v33 }
  0x3d   :  { %583 = vmatpush3.bf16.xpose.msk.msra.mxu0 %vm696_vm1, %v578_v33 }
  0x44   :  { %513 = vmatmul.mubr.msk.f32.vlgmr.msra.gmra.mrb[0].mxu0 %vm71_vm0, %v44_v34 }
  0x45   :  { %515 = vmatprep.mubr.msk.f32.mxu0 %vm71_vm0, %v45_v35 }
  0x48   :  { %516 = vmatmul.mubr.msk.f32.gmra.mrb[2].mxu0 %vm71_vm0, %v46_v36 }
  0x83   :  { %v64_v39 = vpop.permute.xlu1 %63 }
  0x84   :  { %v54_v38 = vpop.permute.xlu0 %53 }
  0x87   :  { %v69_v45 = vpop.permute.xlu1 %68 }
  0x88   :  { %v59_v40 = vpop.permute.xlu0 %58 }
  0x8b   :  { %v233_v59 = vpop.permute.xlu1 %232 }
  0x8c   :  { %v228_v61 = vpop.permute.xlu0 %227 }
  0x90   :  { %v323_v7 = vpop.permute.xlu0 %322 }
 0x117   :  { %v514_v41 = vpop.f32.mrb[0].mxu0 }
 0x118   :  { %v204_v42 = vadd.f32 %v514_v41, %v59_v40  ;;  %v198_v43 = vpop.f32.mrb[1].mxu0 }
 0x119   :  { %v199_v44 = vadd.f32 %v198_v43, %v54_v38 }
 0x11a   :  { %602 = vtanh.f32 %v204_v42 }
 0x11b   :  { %604 = vtanh.f32 %v199_v44  ;;  %v517_v46 = vpop.f32.mrb[2].mxu0 }
 0x11c   :  { %v214_v47 = vadd.f32 %v517_v46, %v69_v45  ;;  %v208_v48 = vpop.f32.mrb[3].mxu0 }
 0x11d   :  { %v209_v49 = vadd.f32 %v208_v48, %v64_v39 }
 0x11e   :  { %606 = vtanh.f32 %v214_v47 }
 0x11f   :  { %608 = vtanh.f32 %v209_v49 }
 0x124   :  { %v603_v50 = vpop.eup %602 }
 0x125   :  { %v605_v51 = vpop.eup %604 }
 0x126   :  { %v584_v52 = vpack.c.bf16 %v603_v50, %v605_v51 }
 0x128   :  { %v607_v53 = vpop.eup %606  ;;  %585 = vmatprep.subr.bf16.mxu1 %v584_v52 }
 0x129   :  { %v609_v54 = vpop.eup %608  ;;  %587 = vmatpush3.bf16.msra.mxu1 %v584_v52 }
 0x12a   :  { %v588_v55 = vpack.c.bf16 %v607_v53, %v609_v54 }
 0x12c   :  { %589 = vmatprep.subr.bf16.mxu1 %v588_v55 }
 0x12d   :  { %591 = vmatpush3.bf16.msra.mxu1 %v588_v55 }
 0x12e   :  { %592 = vmatprep.subr.bf16.mxu1 %v641_v57 }
 0x130   :  { %527 = vmatmul.mubr.msk.f32.vlgmr.msra.gmra.mrb[0].mxu1 %vm71_vm0, %v222_v56 }
 0x131   :  { %533 = vmatprep.mubr.msk.f32.mxu1 %vm642_vm2, %v643_v58 }
 0x203   :  { %v528_v60 = vpop.f32.mrb[0].mxu1 }
 0x204   :  { %v313_v62 = vadd.f32 %v528_v60, %v233_v59  ;;  %v307_v63 = vpop.f32.mrb[1].mxu1 }
 0x205   :  { %v308_v0 = vadd.f32 %v307_v63, %v228_v61 }
 0x206   :  { %610 = vtanh.f32 %v313_v62 }
 0x207   :  { %612 = vtanh.f32 %v308_v0 }
 0x210   :  { %v611_v1 = vpop.eup %610 }
 0x211   :  { %v613_v2 = vpop.eup %612 }
 0x212   :  { %v593_v3 = vpack.c.bf16 %v611_v1, %v613_v2 }
 0x214   :  { %594 = vmatpush3.bf16.msra.mxu1 %v593_v3 }
 0x217   :  { %534 = vmatmul.mubr.msk.f32.vlgmr.msra.gmra.mrb[2].mxu1 %vm325_vm3, %v318_v4 }
 0x2ea   :  { %v395_v8 = vpop.f32.mrb[2].mxu1 }
 0x2eb   :  { %v396_v9 = vadd.f32 %v395_v8, %v323_v7  ;;  %v535_v10 = vpop.f32.mrb[3].mxu1 }
 0x2ed   :  { %614 = vtanh.f32 %v396_v9 }
 0x2f7   :  { %v615_v17 = vpop.eup %614 }
 0x2f8   :  { %v409_v19 = vmul.f32 %v615_v17, %v405_v15 }
 0x2fa   :  { %v410_v20 = vadd.f32 %v409_v19, %v404_v13 }
 0x2fc   :  { %v411_v21 = vmax.f32 %v410_v20, %v408_v18 }
 0x2fe   :  { %412 = vst [vmem:[#allocation2] sm:$0x3] %v411_v21 }
 0x2ff   :  { %627 = shalt.err (!%p624_p4)
}
 0x300   :  { %s628_s4 = scalar_lea.hbm %s838_s7, 32 }
 0x301   :  { %p629_p5 = scmp.ne.s32.totalorder %s838_s7, %s628_s4  ;;  %p632_p6 = scmp.lt.u32.totalorder %s628_s4, %s838_s7 }
 0x303   :  { %p634_p7 = pnand %p632_p6, %p629_p5 }
 0x305   :  { %637 = shalt.err (!%p634_p7)
}
 0x306   :  { %422 = dma.vmem_to_hbm [thread:$0]  %s420_s5, 32, %s838_s7, [#allocation3]  }
 0x307   :  { %638 = dma.done.wait [#allocation3], 32  }
 0x308   :  { %639 = vsyncadd [#allocation3], 4294967264 }
 0x309   :  { %426 = vsyncpa [#allocation3], 1 }

</bundles_post_ra>
